<compile_context>
chip_gen: v5e
topology: v5e:2x2
jax: 0.10.0
libtpu: 0.0.40
codegen_flags: <defaults>
</compile_context>

<pallas_src>
import jax
import jax.numpy as jnp
from jax.experimental import pallas as pl
from jax.experimental.pallas import tpu as pltpu

_LANES = 1024                          # lane-dense last dim (multiple of 128)
_TARGET_BLOCK_BYTES = 8 * 1024 * 1024  # ~8 MiB per block (amortize ~600-cyc step overhead)
_VMEM_LIMIT_BYTES = 48 * 1024 * 1024   # 2 arrays x 2 buffers x 8 MiB + headroom (< v7x 64 MiB)


def _make_affine_kernel(w: float, b: float, out_dtype):
    """Kernel with w/b baked as compile-time constants."""
    def kernel(x_ref, o_ref):
        # Cast-in-vreg (free on the VPU); compute in f32, store in out dtype.
        x = x_ref[...].astype(jnp.float32)
        o_ref[...] = (x * w + b).astype(out_dtype)
    return kernel


def net_forward(x: jax.Array, w, b) -> jax.Array:
    """Elementwise y = x * w + b for an arbitrarily shaped array x."""
    orig_shape = x.shape
    in_dtype = x.dtype
    # Match PyTorch type-promotion: float scalar param * int/bool tensor -> float tensor.
    out_dtype = in_dtype if jnp.issubdtype(in_dtype, jnp.floating) else jnp.float32

    # Bake the scalar parameters as compile-time constants.
    w = float(w)
    b = float(b)

    # Flatten in the NATIVE dtype (no extra HBM pass for a dtype cast).
    xf = x.reshape(-1)
    n = xf.shape[0]
    cols = _LANES

    # Pad only the ragged-lane tail (n % 1024 != 0).  Rows need NOT be a
    # multiple of 8 or of block_rows: Pallas masks the partial last block.
    padded = (n % cols) != 0
    if padded:
        n_pad = ((n + cols - 1) // cols) * cols
        xf = jnp.pad(xf, (0, n_pad - n))
    else:
        n_pad = n
    rows = n_pad // cols

    in_itemsize = jnp.dtype(in_dtype).itemsize
    out_itemsize = jnp.dtype(out_dtype).itemsize

    # Byte-budgeted block rows (f32 -> 2048, bf16 -> 4096, int8 -> 8192),
    # kept a multiple of 8 sublanes.
    rows_per_block = max(8, (_TARGET_BLOCK_BYTES // (cols * in_itemsize)) // 8 * 8)
    block_rows = min(rows, rows_per_block)          # == full dim when input is small
    grid = (pl.cdiv(rows, block_rows),)             # partial last block is masked

    x2d = xf.reshape(rows, cols)

    cost = pl.CostEstimate(
        flops=2 * n_pad,
        bytes_accessed=n_pad * in_itemsize + n_pad * out_itemsize,
        transcendentals=0,
    )

    y2d = pl.pallas_call(
        _make_affine_kernel(w, b, out_dtype),
        out_shape=jax.ShapeDtypeStruct((rows, cols), out_dtype),
        grid=grid,
        in_specs=[pl.BlockSpec((block_rows, cols), lambda i: (i, 0))],
        out_specs=pl.BlockSpec((block_rows, cols), lambda i: (i, 0)),
        compiler_params=pltpu.CompilerParams(
            dimension_semantics=("parallel",),   # shards grid across v7x's 2 TCs
            vmem_limit_bytes=_VMEM_LIMIT_BYTES,
        ),
        cost_estimate=cost,
    )(x2d)

    y = y2d.reshape(-1)
    if padded:                                   # slice only when we actually padded
        y = y[:n]
    return y.reshape(orig_shape)


if __name__ == "__main__":
    key = jax.random.PRNGKey(0)
    # Small example input consistent with the module (elementwise over any shape).
    x = jax.random.normal(key, (2, 4, 16, 16), dtype=jnp.float32)

    # Deterministic parameters matching Net.__init__
    w = 9.0
    b = 0.5

    y = net_forward(x, w, b)
    y = jax.block_until_ready(y)

    # Reference check in plain JAX.
    y_ref = x * jnp.float32(w) + jnp.float32(b)
    assert y.shape == x.shape, "shape mismatch vs input"
    assert y.dtype == x.dtype, "dtype mismatch vs input"
    assert jnp.allclose(y, y_ref, atol=1e-6), "mismatch vs reference"

    print("KERNEL_OK")
</pallas_src>

<mosaic_0001>
module attributes {stable_mosaic.version = 11 : i64} {
  func.func @kernel(%arg0: i32, %arg1: memref<2x1024xf32, #tpu.memory_space<vmem>>, %arg2: memref<2x1024xf32, #tpu.memory_space<vmem>>) attributes {dimension_semantics = [#tpu.dimension_semantics<parallel>], iteration_bounds = array<i64: 1>, scalar_prefetch = 0 : i64, scratch_operands = 0 : i64, tpu.core_type = #tpu.core_type<tc>, window_params = [{transform_indices = @transform_0, window_bounds = array<i64: 2, 1024>}, {transform_indices = @transform_1, window_bounds = array<i64: 2, 1024>}]} {
    %c0 = arith.constant 0 : index
    %c0_0 = arith.constant 0 : index
    %0 = vector.load %arg1[%c0, %c0_0] : memref<2x1024xf32, #tpu.memory_space<vmem>>, vector<2x1024xf32>
    %cst = arith.constant 9.000000e+00 : f32
    %1 = vector.broadcast %cst : f32 to vector<2x1024xf32>
    %2 = arith.mulf %0, %1 : vector<2x1024xf32>
    %cst_1 = arith.constant 5.000000e-01 : f32
    %3 = vector.broadcast %cst_1 : f32 to vector<2x1024xf32>
    %4 = arith.addf %2, %3 : vector<2x1024xf32>
    %c0_2 = arith.constant 0 : index
    %c0_3 = arith.constant 0 : index
    %5 = vector.load %arg2[%c0_2, %c0_3] : memref<2x1024xf32, #tpu.memory_space<vmem>>, vector<2x1024xf32>
    tpu.vector_store %arg2[%c0_2, %c0_3], %4 {strides = array<i32>} : memref<2x1024xf32, #tpu.memory_space<vmem>>, vector<2x1024xf32>,
    return
  }
  func.func @transform_0(%arg0: i32) -> (i32, i32) {
    %c0_i32 = arith.constant 0 : i32
    %c0_i32_0 = arith.constant 0 : i32
    return %arg0, %c0_i32 : i32, i32
  }
  func.func @transform_1(%arg0: i32) -> (i32, i32) {
    %c0_i32 = arith.constant 0 : i32
    %c0_i32_0 = arith.constant 0 : i32
    return %arg0, %c0_i32 : i32, i32
  }
}

</mosaic_0001>

<bundles_post_ra>
// kernel: tpu_custom_call.1
= control target key start
LH: loop header
LB: loop body
LE: loop exit
PB: predicated region body
PF: predicated region fallthrough
CT: control target
= control target key end

     0   :  { %6 = vsyncpa [#allocation3], 0  ;;  %s120_s0 = inlined_call_operand.hbm [shape: f32[2,1024], index: 0, kind: input, shape index: {}]   ;;  %s121_s1 = inlined_call_operand.hbm [shape: f32[2,1024], index: 1, kind: output, shape index: {}]  }
   0x1   :  { %7 = vsyncpa [#allocation4], 0  ;;  %s13_s8 = sshll.u32 %s120_s0, 4  ;;  %s102_s9 = smov [#allocation2]   ;;  %s14_s8 = int_to_ptr.hbm [resolvable:$true] %s13_s8 }
   0x2   :  { %s15_s10 = sshll.u32 %s102_s9, 4  ;;  %s16_s10 = int_to_ptr.vmem [resolvable:$true] %s15_s10 }
   0x3   :  { %18 = dma.hbm_to_vmem [thread:$0]  %s14_s8, 256, %s16_s10, [#allocation3]  }
   0x4   :  { %98 = dma.done.wait [#allocation3], 256  }
   0x5   :  { %99 = vsyncadd [#allocation3], 4294967040  ;;  %v23_v0 = vld [vmem:[#allocation2] sm:$0xff]  ;;  %v24_v1 = vld [vmem:[#allocation2 + $0x8] sm:$0xff]  ;;  %s103_s11 = smov [#allocation5]   ;;  %s38_s15 = sshll.u32 %s121_s1, 4  ;;  %s39_s15 = int_to_ptr.hbm [resolvable:$true] %s38_s15 }
   0x6   :  { %v25_v2 = vmul.f32 9.0, %v23_v0  ;;  %v26_v3 = vmul.f32 9.0, %v24_v1  ;;  %s36_s12 = sshll.u32 %s103_s11, 4  ;;  %s37_s12 = int_to_ptr.vmem [resolvable:$true] %s36_s12 }
   0x8   :  { %v27_v4 = vadd.f32 0.5, %v25_v2  ;;  %v28_v5 = vadd.f32 0.5, %v26_v3 }
   0xa   :  { %29 = vst [vmem:[#allocation5] sm:$0xff] %v27_v4 }
   0xb   :  { %30 = vst [vmem:[#allocation5 + $0x8] sm:$0xff] %v28_v5 }
   0xc   :  { %41 = dma.vmem_to_hbm [thread:$0]  %s37_s12, 256, %s39_s15, [#allocation4]  }
   0xd   :  { %100 = dma.done.wait [#allocation4], 256  }
   0xe   :  { %101 = vsyncadd [#allocation4], 4294967040 }
   0xf   :  { %46 = vsyncpa [#allocation3], 1 }
  0x10   :  { %47 = vsyncpa [#allocation4], 1 }

</bundles_post_ra>
